<compile_context>
chip_gen: v7x
topology: tpu7x:2x2x1
jax: 0.10.0
libtpu: 0.0.40
codegen_flags: <defaults>
</compile_context>

<pallas_src>
import jax
import jax.numpy as jnp
from jax.experimental import pallas as pl
from jax.experimental.pallas import tpu as pltpu

HIDDEN = 100       # per-branch hidden width in the PyTorch module
HIDDEN_PAD = 256   # fused (2*100) hidden width, zero-padded to 2*128
IN_F = 6
OUT_F = 9
LANE = 128


def _relu6(v):
    return jnp.minimum(jnp.maximum(v, 0.0), 6.0)


def _round_up(n, m):
    return ((n + m - 1) // m) * m


# ----------------------------------------------------------------------------
# Kernel: fused two-layer MLP over a channel-major batch tile.
# ----------------------------------------------------------------------------
def mylinear1_kernel(x_ref, w1t_ref, b1_ref, w2t_ref, b2_ref, out_ref):
    x = x_ref[...]                                                    # (6, TB)

    # Fused first layer (block-diagonal weights for the two 3->100 branches).
    h = _relu6(
        jnp.dot(w1t_ref[...], x, preferred_element_type=jnp.float32)
        + b1_ref[...]                                                 # (256, 1) lane-broadcast
    )                                                                 # (256, TB)

    # Fused second layer: row 0 = branch 1, row 1 = branch 2; batch on MXU N axis.
    y = _relu6(
        jnp.dot(w2t_ref[...], h, preferred_element_type=jnp.float32)
        + b2_ref[...]                                                 # (2, 1)
    )                                                                 # (2, TB)

    # Full-lane-width stores into the (9, TB) output slab: [x | y | 1].
    out_ref[0:IN_F, :] = x
    out_ref[IN_F:IN_F + 2, :] = y
    out_ref[IN_F + 2:OUT_F, :] = jnp.ones_like(x[0:1, :])


# ----------------------------------------------------------------------------
# Parameter fusion: block-diagonal / stacked weights built once in the wrapper,
# already transposed for the channel-major orientation.
# ----------------------------------------------------------------------------
def fuse_params(p):
    # W1ᵀ: (HIDDEN_PAD, 6), rows 0:100 <- branch1 (cols 0:3), rows 100:200 <- branch2 (cols 3:6).
    w1t = jnp.zeros((HIDDEN_PAD, IN_F), jnp.float32)
    w1t = w1t.at[0:HIDDEN, 0:3].set(p["w1_1"].T)
    w1t = w1t.at[HIDDEN:2 * HIDDEN, 3:6].set(p["w2_1"].T)

    b1 = jnp.zeros((HIDDEN_PAD, 1), jnp.float32)
    b1 = b1.at[0:HIDDEN, :].set(p["b1_1"].reshape(HIDDEN, 1))
    b1 = b1.at[HIDDEN:2 * HIDDEN, :].set(p["b2_1"].reshape(HIDDEN, 1))

    # W2ᵀ: (2, HIDDEN_PAD), row 0 <- branch1 weights, row 1 <- branch2 weights.
    w2t = jnp.zeros((2, HIDDEN_PAD), jnp.float32)
    w2t = w2t.at[0:1, 0:HIDDEN].set(p["w1_2"].T)
    w2t = w2t.at[1:2, HIDDEN:2 * HIDDEN].set(p["w2_2"].T)

    b2 = jnp.concatenate(
        [p["b1_2"].reshape(1, 1), p["b2_2"].reshape(1, 1)], axis=0
    )                                                                 # (2, 1)
    return w1t, b1, w2t, b2


# ----------------------------------------------------------------------------
# Wrapper: channel-major, batch-tiled pallas_call with resident weights.
# ----------------------------------------------------------------------------
def mylinear1_forward(x, params, *, block_b=4096):
    x = x.astype(jnp.float32)
    B = x.shape[0]
    w1t, b1, w2t, b2 = fuse_params(params)

    # Channel-major: lane axis = batch.
    xt = x.T                                                          # (6, B)

    # Lane-multiple batch tile; target >= 2 grid steps (v7x megacore) when the
    # batch is large enough, and ~block_b rows per step for big batches.
    b128 = _round_up(B, LANE)
    max_tiles = b128 // LANE
    n_tiles = min(max_tiles, max(2, pl.cdiv(b128, block_b)))
    tb = _round_up(pl.cdiv(b128, n_tiles), LANE)
    b_pad = _round_up(B, tb)
    if b_pad != B:
        xt = jnp.pad(xt, ((0, 0), (0, b_pad - B)))

    const = lambda i: (0, 0)   # weights/biases: same block every step -> resident in VMEM

    out_t = pl.pallas_call(
        mylinear1_kernel,
        out_shape=jax.ShapeDtypeStruct((OUT_F, b_pad), jnp.float32),
        grid_spec=pltpu.PrefetchScalarGridSpec(
            num_scalar_prefetch=0,
            grid=(b_pad // tb,),
            in_specs=[
                pl.BlockSpec((IN_F, tb), lambda i: (0, i)),           # x: pipelined batch tiles
                pl.BlockSpec((HIDDEN_PAD, IN_F), const),              # fused W1ᵀ
                pl.BlockSpec((HIDDEN_PAD, 1), const),                 # fused b1 (column)
                pl.BlockSpec((2, HIDDEN_PAD), const),                 # fused W2ᵀ
                pl.BlockSpec((2, 1), const),                          # fused b2 (column)
            ],
            out_specs=pl.BlockSpec((OUT_F, tb), lambda i: (0, i)),
        ),
        compiler_params=pltpu.CompilerParams(
            dimension_semantics=("parallel",),                        # shard batch tiles across TCs
        ),
    )(xt, w1t, b1, w2t, b2)

    out = out_t.T                                                     # (b_pad, 9)
    return out[:B] if b_pad != B else out


# ----------------------------------------------------------------------------
# Param init (mirrors nn.Linear shapes) and pure-JAX reference.
# ----------------------------------------------------------------------------
def init_params(key):
    ks = jax.random.split(key, 8)

    def linear(kw, kb, fan_in, fan_out):
        bound = 1.0 / jnp.sqrt(fan_in)
        w = jax.random.uniform(kw, (fan_out, fan_in), jnp.float32, -bound, bound)
        b = jax.random.uniform(kb, (fan_out,), jnp.float32, -bound, bound)
        return w.T, b.reshape(1, fan_out)   # (in, out), (1, out)

    w1_1, b1_1 = linear(ks[0], ks[1], 3, 100)
    w2_1, b2_1 = linear(ks[2], ks[3], 3, 100)
    w1_2, b1_2 = linear(ks[4], ks[5], 100, 1)
    w2_2, b2_2 = linear(ks[6], ks[7], 100, 1)
    return {
        "w1_1": w1_1, "b1_1": b1_1,
        "w2_1": w2_1, "b2_1": b2_1,
        "w1_2": w1_2, "b1_2": b1_2,
        "w2_2": w2_2, "b2_2": b2_2,
    }


def reference_forward(x, p):
    x1, x2 = x[:, 0:3], x[:, 3:6]
    l1_1 = _relu6(x1 @ p["w1_1"] + p["b1_1"])
    l2_1 = _relu6(x2 @ p["w2_1"] + p["b2_1"])
    l1_2 = _relu6(l1_1 @ p["w1_2"] + p["b1_2"])
    l2_2 = _relu6(l2_1 @ p["w2_2"] + p["b2_2"])
    b = jnp.ones((x.shape[0], 1), jnp.float32)
    return jnp.concatenate([x, l1_2, l2_2, b], axis=1)


if __name__ == "__main__":
    key = jax.random.PRNGKey(0)
    k_x1, k_x2, k_x3, k_p = jax.random.split(key, 4)
    params = init_params(k_p)

    # Small batch (single 128-lane tile).
    B1 = 8
    x1 = jax.random.normal(k_x1, (B1, IN_F), jnp.float32)
    out1 = jax.block_until_ready(mylinear1_forward(x1, params))
    ref1 = reference_forward(x1, params)
    assert out1.shape == (B1, OUT_F), out1.shape
    assert jnp.allclose(out1, ref1, atol=1e-5, rtol=1e-5), "mismatch vs reference (B=8)"

    # Non-multiple-of-128 batch to exercise the padding/slicing path.
    B2 = 50
    x2 = jax.random.normal(k_x2, (B2, IN_F), jnp.float32)
    out2 = jax.block_until_ready(mylinear1_forward(x2, params))
    ref2 = reference_forward(x2, params)
    assert out2.shape == (B2, OUT_F), out2.shape
    assert jnp.allclose(out2, ref2, atol=1e-5, rtol=1e-5), "mismatch vs reference (B=50)"

    # Multi-tile path: small block_b forces several grid steps + padded tail tile.
    B3 = 300
    x3 = jax.random.normal(k_x3, (B3, IN_F), jnp.float32)
    out3 = jax.block_until_ready(mylinear1_forward(x3, params, block_b=128))
    ref3 = reference_forward(x3, params)
    assert out3.shape == (B3, OUT_F), out3.shape
    assert jnp.allclose(out3, ref3, atol=1e-5, rtol=1e-5), "mismatch vs reference (B=300)"

    print("KERNEL_OK")
</pallas_src>

<mosaic_0001>
module attributes {stable_mosaic.version = 11 : i64} {
  func.func @mylinear1_kernel(%arg0: i32, %arg1: memref<6x128xf32, #tpu.memory_space<vmem>>, %arg2: memref<256x6xf32, #tpu.memory_space<vmem>>, %arg3: memref<256x1xf32, #tpu.memory_space<vmem>>, %arg4: memref<2x256xf32, #tpu.memory_space<vmem>>, %arg5: memref<2x1xf32, #tpu.memory_space<vmem>>, %arg6: memref<9x128xf32, #tpu.memory_space<vmem>>) attributes {dimension_semantics = [#tpu.dimension_semantics<parallel>], iteration_bounds = array<i64: 1>, scalar_prefetch = 0 : i64, scratch_operands = 0 : i64, tpu.core_type = #tpu.core_type<tc>, window_params = [{transform_indices = @transform_0, window_bounds = array<i64: 6, 128>}, {pipeline_mode = #tpu.pipeline_mode<synchronous>, transform_indices = @transform_1, window_bounds = array<i64: 256, 6>}, {pipeline_mode = #tpu.pipeline_mode<synchronous>, transform_indices = @transform_2, window_bounds = array<i64: 256, 1>}, {pipeline_mode = #tpu.pipeline_mode<synchronous>, transform_indices = @transform_3, window_bounds = array<i64: 2, 256>}, {pipeline_mode = #tpu.pipeline_mode<synchronous>, transform_indices = @transform_4, window_bounds = array<i64: 2, 1>}, {transform_indices = @transform_5, window_bounds = array<i64: 9, 128>}]} {
    %c0 = arith.constant 0 : index
    %c0_0 = arith.constant 0 : index
    %0 = vector.load %arg1[%c0, %c0_0] : memref<6x128xf32, #tpu.memory_space<vmem>>, vector<6x128xf32>
    %c0_1 = arith.constant 0 : index
    %c0_2 = arith.constant 0 : index
    %1 = vector.load %arg2[%c0_1, %c0_2] : memref<256x6xf32, #tpu.memory_space<vmem>>, vector<256x6xf32>
    %cst = arith.constant dense<0.000000e+00> : vector<256x128xf32>
    %2 = tpu.matmul %1, %0, %cst {dimension_numbers = #tpu.dot_dimension_numbers<[1], [0], [0], [1], [0, 0, 1, 1], [], []>} : vector<256x6xf32>, vector<6x128xf32>, vector<256x128xf32> -> vector<256x128xf32>
    %c0_3 = arith.constant 0 : index
    %c0_4 = arith.constant 0 : index
    %3 = vector.load %arg3[%c0_3, %c0_4] : memref<256x1xf32, #tpu.memory_space<vmem>>, vector<256x1xf32>
    %4 = vector.broadcast %3 : vector<256x1xf32> to vector<256x128xf32>
    %5 = arith.addf %2, %4 : vector<256x128xf32>
    %cst_5 = arith.constant 0.000000e+00 : f32
    %6 = vector.broadcast %cst_5 : f32 to vector<256x128xf32>
    %7 = arith.maximumf %5, %6 : vector<256x128xf32>
    %cst_6 = arith.constant 6.000000e+00 : f32
    %8 = vector.broadcast %cst_6 : f32 to vector<256x128xf32>
    %9 = arith.minimumf %7, %8 : vector<256x128xf32>
    %c0_7 = arith.constant 0 : index
    %c0_8 = arith.constant 0 : index
    %10 = vector.load %arg4[%c0_7, %c0_8] : memref<2x256xf32, #tpu.memory_space<vmem>>, vector<2x256xf32>
    %cst_9 = arith.constant dense<0.000000e+00> : vector<2x128xf32>
    %11 = tpu.matmul %10, %9, %cst_9 {dimension_numbers = #tpu.dot_dimension_numbers<[1], [0], [0], [1], [0, 0, 1, 1], [], []>} : vector<2x256xf32>, vector<256x128xf32>, vector<2x128xf32> -> vector<2x128xf32>
    %c0_10 = arith.constant 0 : index
    %c0_11 = arith.constant 0 : index
    %12 = vector.load %arg5[%c0_10, %c0_11] : memref<2x1xf32, #tpu.memory_space<vmem>>, vector<2x1xf32>
    %13 = vector.broadcast %12 : vector<2x1xf32> to vector<2x128xf32>
    %14 = arith.addf %11, %13 : vector<2x128xf32>
    %cst_12 = arith.constant 0.000000e+00 : f32
    %15 = vector.broadcast %cst_12 : f32 to vector<2x128xf32>
    %16 = arith.maximumf %14, %15 : vector<2x128xf32>
    %cst_13 = arith.constant 6.000000e+00 : f32
    %17 = vector.broadcast %cst_13 : f32 to vector<2x128xf32>
    %18 = arith.minimumf %16, %17 : vector<2x128xf32>
    %c0_14 = arith.constant 0 : index
    %c0_15 = arith.constant 0 : index
    %19 = vector.load %arg6[%c0_14, %c0_15] : memref<9x128xf32, #tpu.memory_space<vmem>>, vector<6x128xf32>
    tpu.vector_store %arg6[%c0_14, %c0_15], %0 {strides = array<i32>} : memref<9x128xf32, #tpu.memory_space<vmem>>, vector<6x128xf32>,
    %c6 = arith.constant 6 : index
    %c0_16 = arith.constant 0 : index
    %20 = vector.load %arg6[%c6, %c0_16] : memref<9x128xf32, #tpu.memory_space<vmem>>, vector<2x128xf32>
    tpu.vector_store %arg6[%c6, %c0_16], %18 {strides = array<i32>} : memref<9x128xf32, #tpu.memory_space<vmem>>, vector<2x128xf32>,
    %cst_17 = arith.constant 1.000000e+00 : f32
    %21 = vector.broadcast %cst_17 : f32 to vector<1x128xf32>
    %c8 = arith.constant 8 : index
    %c0_18 = arith.constant 0 : index
    %22 = vector.load %arg6[%c8, %c0_18] : memref<9x128xf32, #tpu.memory_space<vmem>>, vector<1x128xf32>
    tpu.vector_store %arg6[%c8, %c0_18], %21 {strides = array<i32>} : memref<9x128xf32, #tpu.memory_space<vmem>>, vector<1x128xf32>,
    return
  }
  func.func @transform_0(%arg0: i32) -> (i32, i32) {
    %c0_i32 = arith.constant 0 : i32
    %c0_i32_0 = arith.constant 0 : i32
    return %c0_i32, %arg0 : i32, i32
  }
  func.func @transform_1(%arg0: i32) -> (i32, i32) {
    %c0_i32 = arith.constant 0 : i32
    %c0_i32_0 = arith.constant 0 : i32
    %c0_i32_1 = arith.constant 0 : i32
    return %c0_i32, %c0_i32_0 : i32, i32
  }
  func.func @transform_2(%arg0: i32) -> (i32, i32) {
    %c0_i32 = arith.constant 0 : i32
    %c0_i32_0 = arith.constant 0 : i32
    %c0_i32_1 = arith.constant 0 : i32
    return %c0_i32, %c0_i32_0 : i32, i32
  }
  func.func @transform_3(%arg0: i32) -> (i32, i32) {
    %c0_i32 = arith.constant 0 : i32
    %c0_i32_0 = arith.constant 0 : i32
    %c0_i32_1 = arith.constant 0 : i32
    return %c0_i32, %c0_i32_0 : i32, i32
  }
  func.func @transform_4(%arg0: i32) -> (i32, i32) {
    %c0_i32 = arith.constant 0 : i32
    %c0_i32_0 = arith.constant 0 : i32
    %c0_i32_1 = arith.constant 0 : i32
    return %c0_i32, %c0_i32_0 : i32, i32
  }
  func.func @transform_5(%arg0: i32) -> (i32, i32) {
    %c0_i32 = arith.constant 0 : i32
    %c0_i32_0 = arith.constant 0 : i32
    return %c0_i32, %arg0 : i32, i32
  }
}

</mosaic_0001>

<bundles_post_ra>
// kernel: tpu_custom_call.1
= control target key start
LH: loop header
LB: loop body
LE: loop exit
PB: predicated region body
PF: predicated region fallthrough
CT: control target
= control target key end

     0   :  { %vm343_vm0 = vcmask 1045504   ;;  %vm246_vm1 = vcmask 48128   ;;  %v960_v4 = vmov 0   ;;  %s1365_s0 = inlined_call_operand.vmem [shape: f32[6,128], index: 0, kind: input, shape index: {}]   ;;  %s1366_s1 = inlined_call_operand.vmem [shape: f32[256,6], index: 1, kind: input, shape index: {}]   ;;  %s1367_s2 = inlined_call_operand.vmem [shape: f32[256,1], index: 2, kind: input, shape index: {}]   ;;  %s1368_s3 = inlined_call_operand.vmem [shape: f32[2,256], index: 3, kind: input, shape index: {}]   ;;  %s1369_s4 = inlined_call_operand.vmem [shape: f32[2,1], index: 4, kind: input, shape index: {}]   ;;  %s1370_s5 = inlined_call_operand.hbm [shape: f32[9,128], index: 5, kind: output, shape index: {}]  }
   0x1   :  { %v21_v0 = vld [vmem:[%s1365_s0] sm:$0x3f]  ;;  %v23_v2 = vld [vmem:[%s1366_s1 + $0x8] sm:$0xff]  ;;  %v24_v3 = vld [vmem:[%s1366_s1 + $0x10] sm:$0xff]  ;;  %934 = vset.pattern.permute.xlu0 %v960_v4  ;;  %935 = vset.pattern.permute.xlu1 %v960_v4 }
   0x2   :  { %v22_v1 = vld [vmem:[%s1366_s1] sm:$0xff]  ;;  %847 = vmatprep.subr.msk.mxu0 %vm343_vm0, %v21_v0  ;;  %726 = vst [vmem:[#allocation2] sm:$0x3f] %v21_v0  ;;  %v25_v5 = vld [vmem:[%s1366_s1 + $0x18] sm:$0xff]  ;;  %v71_v9 = vld [vmem:[%s1367_s2 + $0x88] sm:$0xff] }
   0x3   :  { %849 = vmatprep.mubr.msk.f32.mxu0 %vm246_vm1, %v22_v1  ;;  %848 = vmatpush3.msk.msra.mxu0 %vm343_vm0, %v21_v0  ;;  %v70_v6 = vld [vmem:[%s1367_s2 + $0x80] sm:$0xff]  ;;  %v55_v10 = vld [vmem:[%s1367_s2 + $0x8] sm:$0xff]  ;;  %v28_v12 = vld [vmem:[%s1366_s1 + $0x30] sm:$0xff] }
   0x4   :  { %850 = vmatmul.mubr.msk.f32.vlgmr.msra.gmra.mrb[0].mxu0 %vm246_vm1, %v23_v2  ;;  %v26_v7 = vld [vmem:[%s1366_s1 + $0x20] sm:$0xff]  ;;  %168 = vperm.xlu0 %934, %v70_v6   ;;  %v27_v11 = vld [vmem:[%s1366_s1 + $0x28] sm:$0xff]  ;;  %v72_v13 = vld [vmem:[%s1367_s2 + $0x90] sm:$0xff] }
   0x5   :  { %852 = vmatprep.mubr.msk.f32.mxu0 %vm246_vm1, %v24_v3  ;;  %v54_v8 = vld [vmem:[%s1367_s2] sm:$0xff]  ;;  %v73_v14 = vld [vmem:[%s1367_s2 + $0x98] sm:$0xff]  ;;  %v56_v17 = vld [vmem:[%s1367_s2 + $0x10] sm:$0xff] }
   0x6   :  { %88 = vperm.xlu1 %935, %v54_v8   ;;  %v29_v15 = vld [vmem:[%s1366_s1 + $0x38] sm:$0xff]  ;;  %v30_v16 = vld [vmem:[%s1366_s1 + $0x40] sm:$0xff]  ;;  %v31_v19 = vld [vmem:[%s1366_s1 + $0x48] sm:$0xff] }
   0x7   :  { %v57_v18 = vld [vmem:[%s1367_s2 + $0x18] sm:$0xff]  ;;  %v32_v20 = vld [vmem:[%s1366_s1 + $0x50] sm:$0xff]  ;;  %v74_v21 = vld [vmem:[%s1367_s2 + $0xa0] sm:$0xff] }
   0x8   :  { %853 = vmatmul.mubr.msk.f32.gmra.mrb[2].mxu0 %vm246_vm1, %v25_v5  ;;  %173 = vperm.xlu0 %934, %v71_v9   ;;  %v75_v22 = vld [vmem:[%s1367_s2 + $0xa8] sm:$0xff]  ;;  %v33_v23 = vld [vmem:[%s1366_s1 + $0x58] sm:$0xff]  ;;  %v34_v24 = vld [vmem:[%s1366_s1 + $0x60] sm:$0xff] }
   0x9   :  { %855 = vmatprep.mubr.msk.f32.mxu0 %vm246_vm1, %v26_v7  ;;  %v58_v25 = vld [vmem:[%s1367_s2 + $0x20] sm:$0xff] }
   0xa   :  { %93 = vperm.xlu1 %935, %v55_v10  }
   0xc   :  { %856 = vmatmul.mubr.msk.f32.gmra.mrb[4].mxu0 %vm246_vm1, %v27_v11  ;;  %178 = vperm.xlu0 %934, %v72_v13  }
   0xd   :  { %858 = vmatprep.mubr.msk.f32.mxu0 %vm246_vm1, %v28_v12 }
   0xe   :  { %183 = vperm.xlu1 %935, %v73_v14  }
  0x10   :  { %859 = vmatmul.mubr.msk.f32.gmra.mrb[6].mxu0 %vm246_vm1, %v29_v15  ;;  %98 = vperm.xlu0 %934, %v56_v17  }
  0x11   :  { %861 = vmatprep.mubr.msk.f32.mxu0 %vm246_vm1, %v30_v16 }
  0x12   :  { %103 = vperm.xlu1 %935, %v57_v18  }
  0x14   :  { %862 = vmatmul.mubr.msk.f32.gmra.mrb[8].mxu0 %vm246_vm1, %v31_v19  ;;  %188 = vperm.xlu0 %934, %v74_v21  }
  0x15   :  { %864 = vmatprep.mubr.msk.f32.mxu0 %vm246_vm1, %v32_v20 }
  0x16   :  { %193 = vperm.xlu1 %935, %v75_v22  }
  0x17   :  { %10 = vsyncpa [#allocation3], 0  ;;  %v59_v26 = vld [vmem:[%s1367_s2 + $0x28] sm:$0xff]  ;;  %v36_v28 = vld [vmem:[%s1366_s1 + $0x70] sm:$0xff] }
  0x18   :  { %865 = vmatmul.mubr.msk.f32.gmra.mrb[10].mxu0 %vm246_vm1, %v33_v23  ;;  %v35_v27 = vld [vmem:[%s1366_s1 + $0x68] sm:$0xff]  ;;  %108 = vperm.xlu0 %934, %v58_v25   ;;  %v76_v29 = vld [vmem:[%s1367_s2 + $0xb0] sm:$0xff]  ;;  %v77_v30 = vld [vmem:[%s1367_s2 + $0xb8] sm:$0xff] }
  0x19   :  { %867 = vmatprep.mubr.msk.f32.mxu0 %vm246_vm1, %v34_v24  ;;  %v37_v31 = vld [vmem:[%s1366_s1 + $0x78] sm:$0xff]  ;;  %v38_v32 = vld [vmem:[%s1366_s1 + $0x80] sm:$0xff]  ;;  %v60_v33 = vld [vmem:[%s1367_s2 + $0x30] sm:$0xff] }
  0x1a   :  { %113 = vperm.xlu1 %935, %v59_v26   ;;  %v61_v34 = vld [vmem:[%s1367_s2 + $0x38] sm:$0xff]  ;;  %v39_v35 = vld [vmem:[%s1366_s1 + $0x88] sm:$0xff]  ;;  %v40_v36 = vld [vmem:[%s1366_s1 + $0x90] sm:$0xff] }
  0x1b   :  { %v78_v37 = vld [vmem:[%s1367_s2 + $0xc0] sm:$0xff]  ;;  %v79_v38 = vld [vmem:[%s1367_s2 + $0xc8] sm:$0xff]  ;;  %v41_v39 = vld [vmem:[%s1366_s1 + $0x98] sm:$0xff] }
  0x1c   :  { %868 = vmatmul.mubr.msk.f32.gmra.mrb[12].mxu0 %vm246_vm1, %v35_v27  ;;  %198 = vperm.xlu0 %934, %v76_v29   ;;  %v42_v40 = vld [vmem:[%s1366_s1 + $0xa0] sm:$0xff]  ;;  %v63_v42 = vld [vmem:[%s1367_s2 + $0x48] sm:$0xff]  ;;  %v44_v44 = vld [vmem:[%s1366_s1 + $0xb0] sm:$0xff] }
  0x1d   :  { %870 = vmatprep.mubr.msk.f32.mxu0 %vm246_vm1, %v36_v28  ;;  %v62_v41 = vld [vmem:[%s1367_s2 + $0x40] sm:$0xff]  ;;  %v43_v43 = vld [vmem:[%s1366_s1 + $0xa8] sm:$0xff]  ;;  %v80_v45 = vld [vmem:[%s1367_s2 + $0xd0] sm:$0xff] }
  0x1e   :  { %203 = vperm.xlu1 %935, %v77_v30   ;;  %v81_v46 = vld [vmem:[%s1367_s2 + $0xd8] sm:$0xff]  ;;  %v46_v48 = vld [vmem:[%s1366_s1 + $0xc0] sm:$0xff]  ;;  %v64_v49 = vld [vmem:[%s1367_s2 + $0x50] sm:$0xff] }
  0x1f   :  { %v45_v47 = vld [vmem:[%s1366_s1 + $0xb8] sm:$0xff]  ;;  %v47_v51 = vld [vmem:[%s1366_s1 + $0xc8] sm:$0xff]  ;;  %v48_v52 = vld [vmem:[%s1366_s1 + $0xd0] sm:$0xff] }
  0x20   :  { %871 = vmatmul.mubr.msk.f32.gmra.mrb[14].mxu0 %vm246_vm1, %v37_v31  ;;  %118 = vperm.xlu0 %934, %v60_v33   ;;  %v65_v50 = vld [vmem:[%s1367_s2 + $0x58] sm:$0xff]  ;;  %v82_v53 = vld [vmem:[%s1367_s2 + $0xe0] sm:$0xff]  ;;  %v83_v54 = vld [vmem:[%s1367_s2 + $0xe8] sm:$0xff] }
  0x21   :  { %873 = vmatprep.mubr.msk.f32.mxu0 %vm246_vm1, %v38_v32  ;;  %v49_v55 = vld [vmem:[%s1366_s1 + $0xd8] sm:$0xff]  ;;  %v50_v56 = vld [vmem:[%s1366_s1 + $0xe0] sm:$0xff]  ;;  %v67_v58 = vld [vmem:[%s1367_s2 + $0x68] sm:$0xff] }
  0x22   :  { %123 = vperm.xlu1 %935, %v61_v34   ;;  %v66_v57 = vld [vmem:[%s1367_s2 + $0x60] sm:$0xff]  ;;  %v51_v59 = vld [vmem:[%s1366_s1 + $0xe8] sm:$0xff]  ;;  %v52_v60 = vld [vmem:[%s1366_s1 + $0xf0] sm:$0xff] }
  0x23   :  { %v84_v61 = vld [vmem:[%s1367_s2 + $0xf0] sm:$0xff]  ;;  %v85_v62 = vld [vmem:[%s1367_s2 + $0xf8] sm:$0xff]  ;;  %v637_v2 = vld [vmem:[%s1369_s4] sm:$0x3] }
  0x24   :  { %874 = vmatmul.mubr.msk.f32.gmra.mrb[16].mxu0 %vm246_vm1, %v39_v35  ;;  %208 = vperm.xlu0 %934, %v78_v37   ;;  %v53_v63 = vld [vmem:[%s1366_s1 + $0xf8] sm:$0xff]  ;;  %v68_v0 = vld [vmem:[%s1367_s2 + $0x70] sm:$0xff]  ;;  %v1230_v5 = vld.sshfl [vmem:[%s1368_s3] sm:$0x33 pattern:$0x76325410] }
  0x25   :  { %876 = vmatprep.mubr.msk.f32.mxu0 %vm246_vm1, %v40_v36  ;;  %v69_v1 = vld [vmem:[%s1367_s2 + $0x78] sm:$0xff]  ;;  %v651_v6 = vcombine.high %v1230_v5, %v1230_v5  ;;  %s962_s2 = smov [#allocation2]  }
  0x26   :  { %213 = vperm.xlu1 %935, %v79_v38   ;;  %s734_s3 = sshll.u32 %s962_s2, 4  ;;  %s735_s3 = int_to_ptr.vmem [resolvable:$true] %s734_s3 }
  0x27   :  { %718 = vmatprep.mubr.f32.mxu1 %v651_v6  ;;  %s936_s4 = scalar_lea.vmem %s735_s3, 256  ;;  %p941_p1 = scmp.lt.s32.totalorder %s735_s3, %s735_s3 }
  0x28   :  { %877 = vmatmul.mubr.msk.f32.gmra.mrb[18].mxu0 %vm246_vm1, %v41_v39  ;;  %128 = vperm.xlu0 %934, %v62_v41   ;;  %p937_p0 = scmp.ne.s32.totalorder %s735_s3, %s936_s4  ;;  %p942_p2 = scmp.lt.s32.totalorder %s936_s4, %s936_s4 }
  0x29   :  { %879 = vmatprep.mubr.msk.f32.mxu0 %vm246_vm1, %v42_v40 }
  0x2a   :  { %133 = vperm.xlu1 %935, %v63_v42   ;;  %p943_p3 = por %p942_p2, %p941_p1 }
  0x2c   :  { %880 = vmatmul.mubr.msk.f32.gmra.mrb[20].mxu0 %vm246_vm1, %v43_v43  ;;  %218 = vperm.xlu0 %934, %v80_v45   ;;  %p944_p4 = pnand %p943_p3, %p937_p0 }
  0x2d   :  { %882 = vmatprep.mubr.msk.f32.mxu0 %vm246_vm1, %v44_v44 }
  0x2e   :  { %223 = vperm.xlu1 %935, %v81_v46  }
  0x30   :  { %883 = vmatmul.mubr.msk.f32.gmra.mrb[22].mxu0 %vm246_vm1, %v45_v47  ;;  %138 = vperm.xlu0 %934, %v64_v49  }
  0x31   :  { %885 = vmatprep.mubr.msk.f32.mxu0 %vm246_vm1, %v46_v48 }
  0x32   :  { %143 = vperm.xlu1 %935, %v65_v50  }
  0x34   :  { %886 = vmatmul.mubr.msk.f32.gmra.mrb[24].mxu0 %vm246_vm1, %v47_v51  ;;  %228 = vperm.xlu0 %934, %v82_v53  }
  0x35   :  { %888 = vmatprep.mubr.msk.f32.mxu0 %vm246_vm1, %v48_v52 }
  0x36   :  { %233 = vperm.xlu1 %935, %v83_v54  }
  0x38   :  { %889 = vmatmul.mubr.msk.f32.gmra.mrb[26].mxu0 %vm246_vm1, %v49_v55  ;;  %148 = vperm.xlu0 %934, %v66_v57  }
  0x39   :  { %891 = vmatprep.mubr.msk.f32.mxu0 %vm246_vm1, %v50_v56 }
  0x3a   :  { %153 = vperm.xlu1 %935, %v67_v58  }
  0x3c   :  { %892 = vmatmul.mubr.msk.f32.gmra.mrb[28].mxu0 %vm246_vm1, %v51_v59  ;;  %238 = vperm.xlu0 %934, %v84_v61  }
  0x3d   :  { %894 = vmatprep.mubr.msk.f32.mxu0 %vm246_vm1, %v52_v60 }
  0x3e   :  { %243 = vperm.xlu1 %935, %v85_v62  }
  0x40   :  { %895 = vmatmul.mubr.msk.f32.gmra.mrb[30].mxu0 %vm246_vm1, %v53_v63  ;;  %158 = vperm.xlu0 %934, %v68_v0  }
  0x42   :  { %163 = vperm.xlu1 %935, %v69_v1  }
  0x44   :  { %640 = vperm.xlu0 %934, %v637_v2  }
  0x83   :  { %v1225_v4 = vpop.permute.xlu0 %168 }
  0x85   :  { %v89_v3 = vpop.permute.xlu1 %88 }
  0x87   :  { %v1234_v8 = vpop.permute.xlu0 %173 }
  0x89   :  { %v94_v7 = vpop.permute.xlu1 %93 }
  0x8b   :  { %v1238_v10 = vpop.permute.xlu0 %178 }
  0x8d   :  { %v1236_v9 = vpop.permute.xlu1 %183 }
  0x8f   :  { %v99_v12 = vpop.permute.xlu0 %98 }
  0x91   :  { %v104_v11 = vpop.permute.xlu1 %103 }
  0x93   :  { %v1242_v14 = vpop.permute.xlu0 %188 }
  0x95   :  { %v1240_v13 = vpop.permute.xlu1 %193 }
  0x97   :  { %v109_v16 = vpop.permute.xlu0 %108 }
  0x99   :  { %v114_v15 = vpop.permute.xlu1 %113 }
  0x9b   :  { %v1246_v18 = vpop.permute.xlu0 %198 }
  0x9d   :  { %v1244_v17 = vpop.permute.xlu1 %203 }
  0x9f   :  { %v119_v20 = vpop.permute.xlu0 %118 }
  0xa1   :  { %v124_v19 = vpop.permute.xlu1 %123 }
  0xa3   :  { %v1250_v22 = vpop.permute.xlu0 %208 }
  0xa5   :  { %v1248_v21 = vpop.permute.xlu1 %213 }
  0xa7   :  { %v129_v24 = vpop.permute.xlu0 %128 }
  0xa9   :  { %v134_v23 = vpop.permute.xlu1 %133 }
  0xab   :  { %v1254_v26 = vpop.permute.xlu0 %218 }
  0xad   :  { %v1252_v25 = vpop.permute.xlu1 %223 }
  0xaf   :  { %v139_v35 = vpop.permute.xlu0 %138 }
  0xb1   :  { %v144_v32 = vpop.permute.xlu1 %143 }
  0xb3   :  { %v1268_v51 = vpop.permute.xlu0 %228 }
  0xb5   :  { %v1264_v48 = vpop.permute.xlu1 %233 }
  0xb7   :  { %v149_v2 = vpop.permute.xlu0 %148 }
  0xb9   :  { %v154_v62 = vpop.permute.xlu1 %153 }
  0xd7   :  { %v851_v27 = vpop.f32.mrb[0].mxu0 }
  0xd8   :  { %v419_v28 = vadd.f32 %v851_v27, %v94_v7  ;;  %v413_v29 = vpop.f32.mrb[1].mxu0 }
  0xd9   :  { %v414_v30 = vadd.f32 %v413_v29, %v89_v3 }
  0xda   :  { %v573_v31 = vmax.f32 %v419_v28, 0.0 }
  0xdb   :  { %v572_v33 = vmax.f32 %v414_v30, 0.0  ;;  %v854_v34 = vpop.f32.mrb[2].mxu0  ;;  %v1286_v30 = vpop.permute.xlu1 %243 }
  0xdc   :  { %v1256_v36 = vmin.f32 %v573_v31, 6.0  ;;  %v429_v37 = vadd.f32 %v854_v34, %v104_v11  ;;  %v423_v38 = vpop.f32.mrb[3].mxu0 }
  0xdd   :  { %v1258_v39 = vmin.f32 %v572_v33, 6.0  ;;  %v424_v40 = vadd.f32 %v423_v38, %v99_v12 }
  0xde   :  { %v575_v41 = vmax.f32 %v429_v37, 0.0 }
  0xdf   :  { %v574_v42 = vmax.f32 %v424_v40, 0.0  ;;  %v857_v43 = vpop.f32.mrb[4].mxu0  ;;  %v899_v44 = vpack.c.bf16 %v1256_v36, %v1258_v39 }
  0xe0   :  { %v1262_v45 = vmin.f32 %v575_v41, 6.0  ;;  %v439_v46 = vadd.f32 %v857_v43, %v114_v15  ;;  %v433_v47 = vpop.f32.mrb[5].mxu0 }
  0xe1   :  { %v1266_v49 = vmin.f32 %v574_v42, 6.0  ;;  %v434_v50 = vadd.f32 %v433_v47, %v109_v16  ;;  %v164_v47 = vpop.permute.xlu1 %163 }
  0xe2   :  { %v577_v52 = vmax.f32 %v439_v46, 0.0 }
  0xe3   :  { %v903_v53 = vpack.c.bf16 %v1262_v45, %v1266_v49  ;;  %v576_v54 = vmax.f32 %v434_v50, 0.0  ;;  %v860_v55 = vpop.f32.mrb[6].mxu0 }
  0xe4   :  { %v1272_v56 = vmin.f32 %v577_v52, 6.0  ;;  %v449_v57 = vadd.f32 %v860_v55, %v124_v19  ;;  %v443_v58 = vpop.f32.mrb[7].mxu0 }
  0xe5   :  { %v1274_v59 = vmin.f32 %v576_v54, 6.0  ;;  %v444_v60 = vadd.f32 %v443_v58, %v119_v20 }
  0xe6   :  { %v579_v61 = vmax.f32 %v449_v57, 0.0 }
  0xe7   :  { %v907_v63 = vpack.c.bf16 %v1272_v56, %v1274_v59  ;;  %v578_v0 = vmax.f32 %v444_v60, 0.0  ;;  %v863_v1 = vpop.f32.mrb[8].mxu0 }
  0xe8   :  { %v1278_v3 = vmin.f32 %v579_v61, 6.0  ;;  %v459_v6 = vadd.f32 %v863_v1, %v134_v23  ;;  %v453_v7 = vpop.f32.mrb[9].mxu0  ;;  %v1290_v23 = vpop.permute.xlu0 %238 }
  0xe9   :  { %v1280_v11 = vmin.f32 %v578_v0, 6.0  ;;  %v454_v12 = vadd.f32 %v453_v7, %v129_v24 }
  0xea   :  { %v581_v15 = vmax.f32 %v459_v6, 0.0 }
  0xeb   :  { %v911_v16 = vpack.c.bf16 %v1278_v3, %v1280_v11  ;;  %v580_v19 = vmax.f32 %v454_v12, 0.0  ;;  %v866_v20 = vpop.f32.mrb[10].mxu0 }
  0xec   :  { %v1284_v27 = vmin.f32 %v581_v15, 6.0  ;;  %v469_v28 = vadd.f32 %v866_v20, %v144_v32  ;;  %v463_v29 = vpop.f32.mrb[11].mxu0  ;;  %v159_v54 = vpop.permute.xlu0 %158 }
  0xed   :  { %v1288_v31 = vmin.f32 %v580_v19, 6.0  ;;  %v464_v33 = vadd.f32 %v463_v29, %v139_v35 }
  0xee   :  { %v583_v34 = vmax.f32 %v469_v28, 0.0 }
  0xef   :  { %v915_v24 = vpack.c.bf16 %v1284_v27, %v1288_v31  ;;  %v582_v37 = vmax.f32 %v464_v33, 0.0  ;;  %v869_v38 = vpop.f32.mrb[12].mxu0 }
  0xf0   :  { %v1294_v40 = vmin.f32 %v583_v34, 6.0  ;;  %v479_v41 = vadd.f32 %v869_v38, %v154_v62  ;;  %v473_v42 = vpop.f32.mrb[13].mxu0 }
  0xf1   :  { %v1296_v43 = vmin.f32 %v582_v37, 6.0  ;;  %v474_v32 = vadd.f32 %v473_v42, %v149_v2 }
  0xf2   :  { %v585_v46 = vmax.f32 %v479_v41, 0.0 }
  0xf3   :  { %v919_v35 = vpack.c.bf16 %v1294_v40, %v1296_v43  ;;  %v584_v50 = vmax.f32 %v474_v32, 0.0  ;;  %v872_v52 = vpop.f32.mrb[14].mxu0 }
  0xf4   :  { %v1300_v55 = vmin.f32 %v585_v46, 6.0  ;;  %v489_v57 = vadd.f32 %v872_v52, %v164_v47  ;;  %v483_v58 = vpop.f32.mrb[15].mxu0 }
  0xf5   :  { %v1302_v60 = vmin.f32 %v584_v50, 6.0  ;;  %v484_v61 = vadd.f32 %v483_v58, %v159_v54 }
  0xf6   :  { %v587_v62 = vmax.f32 %v489_v57, 0.0 }
  0xf7   :  { %v923_v0 = vpack.c.bf16 %v1300_v55, %v1302_v60  ;;  %v586_v1 = vmax.f32 %v484_v61, 0.0  ;;  %v875_v2 = vpop.f32.mrb[16].mxu0 }
  0xf8   :  { %v1306_v6 = vmin.f32 %v587_v62, 6.0  ;;  %v499_v7 = vadd.f32 %v875_v2, %v1234_v8  ;;  %v493_v12 = vpop.f32.mrb[17].mxu0 }
  0xf9   :  { %v1309_v15 = vmin.f32 %v586_v1, 6.0  ;;  %v494_v19 = vadd.f32 %v493_v12, %v1225_v4 }
  0xfa   :  { %v589_v20 = vmax.f32 %v499_v7, 0.0 }
  0xfb   :  { %v927_v28 = vpack.c.bf16 %v1306_v6, %v1309_v15  ;;  %v588_v29 = vmax.f32 %v494_v19, 0.0  ;;  %v878_v33 = vpop.f32.mrb[18].mxu0 }
  0xfc   :  { %v621_v34 = vmin.f32 %v589_v20, 6.0  ;;  %v509_v37 = vadd.f32 %v878_v33, %v1236_v9  ;;  %v503_v38 = vpop.f32.mrb[19].mxu0 }
  0xfd   :  { %v620_v41 = vmin.f32 %v588_v29, 6.0  ;;  %v504_v42 = vadd.f32 %v503_v38, %v1238_v10 }
  0xfe   :  { %v591_v32 = vmax.f32 %v509_v37, 0.0 }
  0xff   :  { %v590_v8 = vmax.f32 %v504_v42, 0.0  ;;  %v881_v46 = vpop.f32.mrb[20].mxu0  ;;  %v897_v47 = vpack.c.bf16 %v621_v34, %v620_v41 }
 0x100   :  { %v623_v50 = vmin.f32 %v591_v32, 6.0  ;;  %v519_v4 = vadd.f32 %v881_v46, %v1240_v13  ;;  %v513_v52 = vpop.f32.mrb[21].mxu0 }
 0x101   :  { %v622_v54 = vmin.f32 %v590_v8, 6.0  ;;  %v514_v57 = vadd.f32 %v513_v52, %v1242_v14  ;;  %898 = vmatprep.subr.bf16.mxu1 %v897_v47 }
 0x102   :  { %v593_v58 = vmax.f32 %v519_v4, 0.0  ;;  %900 = vmatpush3.bf16.msra.mxu1 %v899_v44 }
 0x103   :  { %v901_v9 = vpack.c.bf16 %v623_v50, %v622_v54  ;;  %v592_v61 = vmax.f32 %v514_v57, 0.0  ;;  %v884_v10 = vpop.f32.mrb[22].mxu0 }
 0x104   :  { %v625_v62 = vmin.f32 %v593_v58, 6.0  ;;  %v529_v1 = vadd.f32 %v884_v10, %v1244_v17  ;;  %v523_v2 = vpop.f32.mrb[23].mxu0 }
 0x105   :  { %v624_v7 = vmin.f32 %v592_v61, 6.0  ;;  %v524_v13 = vadd.f32 %v523_v2, %v1246_v18  ;;  %902 = vmatprep.subr.bf16.mxu1 %v901_v9 }
 0x106   :  { %v595_v12 = vmax.f32 %v529_v1, 0.0  ;;  %904 = vmatpush3.bf16.msra.mxu1 %v903_v53 }
 0x107   :  { %v905_v14 = vpack.c.bf16 %v625_v62, %v624_v7  ;;  %v594_v19 = vmax.f32 %v524_v13, 0.0  ;;  %v887_v36 = vpop.f32.mrb[24].mxu0 }
 0x108   :  { %v627_v39 = vmin.f32 %v595_v12, 6.0  ;;  %v539_v44 = vadd.f32 %v887_v36, %v1248_v21  ;;  %v533_v20 = vpop.f32.mrb[25].mxu0 }
 0x109   :  { %v626_v29 = vmin.f32 %v594_v19, 6.0  ;;  %v534_v17 = vadd.f32 %v533_v20, %v1250_v22  ;;  %906 = vmatprep.subr.bf16.mxu1 %v905_v14 }
 0x10a   :  { %v597_v33 = vmax.f32 %v539_v44, 0.0  ;;  %908 = vmatpush3.bf16.msra.mxu1 %v907_v63 }
 0x10b   :  { %v909_v18 = vpack.c.bf16 %v627_v39, %v626_v29  ;;  %v596_v34 = vmax.f32 %v534_v17, 0.0  ;;  %v890_v45 = vpop.f32.mrb[26].mxu0 }
 0x10c   :  { %v629_v49 = vmin.f32 %v597_v33, 6.0  ;;  %v549_v53 = vadd.f32 %v890_v45, %v1252_v25  ;;  %v543_v37 = vpop.f32.mrb[27].mxu0 }
 0x10d   :  { %v628_v38 = vmin.f32 %v596_v34, 6.0  ;;  %v544_v21 = vadd.f32 %v543_v37, %v1254_v26  ;;  %910 = vmatprep.subr.bf16.mxu1 %v909_v18 }
 0x10e   :  { %v599_v41 = vmax.f32 %v549_v53, 0.0  ;;  %912 = vmatpush3.bf16.msra.mxu1 %v911_v16 }
 0x10f   :  { %v913_v22 = vpack.c.bf16 %v629_v49, %v628_v38  ;;  %v598_v42 = vmax.f32 %v544_v21, 0.0  ;;  %v893_v56 = vpop.f32.mrb[28].mxu0 }
 0x110   :  { %v631_v59 = vmin.f32 %v599_v41, 6.0  ;;  %v559_v63 = vadd.f32 %v893_v56, %v1264_v48  ;;  %v553_v32 = vpop.f32.mrb[29].mxu0 }
 0x111   :  { %v630_v8 = vmin.f32 %v598_v42, 6.0  ;;  %v554_v25 = vadd.f32 %v553_v32, %v1268_v51  ;;  %914 = vmatprep.subr.bf16.mxu1 %v913_v22 }
 0x112   :  { %v601_v46 = vmax.f32 %v559_v63, 0.0  ;;  %916 = vmatpush3.bf16.msra.mxu1 %v915_v24 }
 0x113   :  { %v917_v26 = vpack.c.bf16 %v631_v59, %v630_v8  ;;  %v600_v47 = vmax.f32 %v554_v25, 0.0  ;;  %v896_v3 = vpop.f32.mrb[30].mxu0 }
 0x114   :  { %v633_v11 = vmin.f32 %v601_v46, 6.0  ;;  %v569_v16 = vadd.f32 %v896_v3, %v1286_v30  ;;  %v563_v50 = vpop.f32.mrb[31].mxu0 }
 0x115   :  { %v632_v4 = vmin.f32 %v600_v47, 6.0  ;;  %v564_v48 = vadd.f32 %v563_v50, %v1290_v23  ;;  %918 = vmatprep.subr.bf16.mxu1 %v917_v26  ;;  %v961_v23 = vmov 1.0  }
 0x116   :  { %v603_v52 = vmax.f32 %v569_v16, 0.0  ;;  %920 = vmatpush3.bf16.msra.mxu1 %v919_v35  ;;  %728 = vst [vmem:[#allocation2 + $0x8] sm:$0x1] %v961_v23  ;;  %v641_v35 = vpop.permute.xlu0 %640 }
 0x117   :  { %v921_v51 = vpack.c.bf16 %v633_v11, %v632_v4  ;;  %v602_v54 = vmax.f32 %v564_v48, 0.0 }
 0x118   :  { %v635_v27 = vmin.f32 %v603_v52, 6.0 }
 0x119   :  { %v634_v31 = vmin.f32 %v602_v54, 6.0  ;;  %922 = vmatprep.subr.bf16.mxu1 %v921_v51 }
 0x11a   :  { %924 = vmatpush3.bf16.msra.mxu1 %v923_v0 }
 0x11b   :  { %v925_v30 = vpack.c.bf16 %v635_v27, %v634_v31 }
 0x11d   :  { %926 = vmatprep.subr.bf16.mxu1 %v925_v30 }
 0x11e   :  { %928 = vmatpush3.bf16.msra.mxu1 %v927_v28 }
 0x121   :  { %719 = vmatmul.mubr.f32.vlgmr.msra.gmra.mrb[0].mxu1 %v1230_v5 }
 0x1f4   :  { %v844_v24 = vpop.f32.mrb[0].mxu1 }
 0x1f5   :  { %v845_v40 = vpop.f32.mrb[1].mxu1 }
 0x1f6   :  { %v846_v43 = vadd.f32 %v845_v40, %v844_v24 }
 0x1f8   :  { %v721_v57 = vadd.f32 %v846_v43, %v641_v35 }
 0x1fa   :  { %v724_v58 = vmax.f32 %v721_v57, 0.0 }
 0x1fc   :  { %v725_v55 = vmin.f32 %v724_v58, 6.0 }
 0x1fe   :  { %727 = vst [vmem:[#allocation2 + $0x6] sm:$0x3] %v725_v55 }
 0x1ff   :  { %947 = shalt.err (!%p944_p4)
}
 0x200   :  { %s948_s23 = scalar_lea.hbm %s1370_s5, 256 }
 0x201   :  { %p949_p5 = scmp.ne.s32.totalorder %s1370_s5, %s948_s23  ;;  %p952_p6 = scmp.lt.u32.totalorder %s948_s23, %s1370_s5 }
 0x203   :  { %p954_p7 = pnand %p952_p6, %p949_p5 }
 0x205   :  { %957 = shalt.err (!%p954_p7)
}
 0x206   :  { %s963_s27 = smov 128   ;;  %s964_s28 = smov 8  }
 0x207   :  { %740 = dma.vmem_to_hbm [thread:$0]  %s735_s3, 256, %s1370_s5, [#allocation3], %s963_s27, %s963_s27, %s964_s28  }
 0x208   :  { %958 = dma.done.wait [#allocation3], 256  }
 0x209   :  { %959 = vsyncadd [#allocation3], 4294967040 }
 0x20a   :  { %744 = vsyncpa [#allocation3], 1 }

</bundles_post_ra>
